<compile_context>
chip_gen: v6e
topology: v6e:2x2x1
jax: 0.10.0
libtpu: 0.0.40
codegen_flags: <defaults>
</compile_context>

<pallas_src>
import functools

import jax
import jax.numpy as jnp
from jax.experimental import pallas as pl
from jax.experimental.pallas import tpu as pltpu


def _round_up(x, m):
    return ((x + m - 1) // m) * m


def _mlp_kernel(n_hidden, x_ref, *refs):
    """refs = (w0T, b0, ..., w_{n-1}T, b_{n-1}, wLT, bL, out_ref).

    Batch-on-lanes dataflow:
      X   = obs_tile.T                      (obs_dim, tb)   one XLU transpose
      H_i = relu(W_iT @ H_{i-1} + b_i)      (H, tb)         lane-dense
      out = wLT @ H_last + bL               (1, tb)         lane-dense row

    All ops are independent per batch column, so garbage columns from a
    partial (tail) block never contaminate valid outputs and are masked on
    writeback.  Do NOT add cross-column (cross-row-of-obs) ops here.
    """
    out_ref = refs[-1]
    wb = refs[:-1]

    x = x_ref[...]
    if x.dtype != jnp.float32:
        x = x.astype(jnp.float32)          # cheap VPU cast; HBM read was narrow
    h = x.T                                # (obs_dim, tb) — XLU, idle slot here

    for layer in range(n_hidden):
        wt = wb[2 * layer][...]            # (out, in), VMEM-resident
        bc = wb[2 * layer + 1][...]        # (out, 1)
        h = jnp.dot(wt, h, preferred_element_type=jnp.float32) + bc
        h = jnp.maximum(h, 0.0)

    w_last = wb[2 * n_hidden][...]         # (1, H)
    b_last = wb[2 * n_hidden + 1][...]     # (1, 1)
    out_ref[...] = jnp.dot(w_last, h, preferred_element_type=jnp.float32) + b_last


def baseline_forward(observations, params, *, block_rows=4096, obs_dtype=None):
    """Baseline MLP forward pass as a batch-tiled fused Pallas kernel.

    Args:
      observations: jnp.float32 [batch, obs_dim]
      params: list of (W [in, out], b [1, out]) tuples, hidden layers first,
              final layer maps to out=1.
      block_rows: max batch rows per grid step (rounded to a multiple of 128).
      obs_dtype: optional narrower streaming dtype for observations
                 (e.g. jnp.bfloat16) to halve HBM read traffic; math stays f32.
    Returns:
      jnp.float32 [batch]  (matches torch's output.squeeze() for batch > 1).
    """
    batch, obs_dim = observations.shape
    n_hidden = len(params) - 1

    obs = observations
    if obs_dtype is not None and obs.dtype != obs_dtype:
        obs = obs.astype(obs_dtype)

    # ---- tile-size selection (no round-up padding of the batch) ------------
    block_rows = max(128, _round_up(int(block_rows), 128))
    if batch <= block_rows and batch < 256:
        tb = batch                                   # single exact block
    else:
        tb = min(block_rows, _round_up(batch, 128))
        if pl.cdiv(batch, tb) < 2:
            # keep >= 2 parallel grid steps so v7x's 2nd TensorCore has work
            tb = _round_up(pl.cdiv(batch, 2), 128)
    num_blocks = pl.cdiv(batch, tb)                  # partial tail block is OK
    grid = (num_blocks,)

    # ---- weight preparation (tiny, done once outside the kernel) -----------
    prepared = []
    for w, b in params[:-1]:
        wt = jnp.asarray(w, jnp.float32).T                       # (out, in)
        bc = jnp.asarray(b, jnp.float32).reshape(-1, 1)          # (out, 1)
        prepared.append((wt, bc))
    w_last, b_last = params[-1]
    w_last_t = jnp.asarray(w_last, jnp.float32).reshape(-1, 1).T  # (1, H)
    b_last = jnp.asarray(b_last, jnp.float32).reshape(1, 1)       # (1, 1)

    flat = []
    in_specs = [pl.BlockSpec((tb, obs_dim), lambda i: (i, 0))]    # batch-tiled
    for wt, bc in prepared:
        flat += [wt, bc]
        in_specs.append(pl.BlockSpec(wt.shape, lambda i: (0, 0)))  # resident
        in_specs.append(pl.BlockSpec(bc.shape, lambda i: (0, 0)))  # resident
    flat += [w_last_t, b_last]
    in_specs.append(pl.BlockSpec(w_last_t.shape, lambda i: (0, 0)))
    in_specs.append(pl.BlockSpec(b_last.shape, lambda i: (0, 0)))

    # ---- advisory cost estimate / VMEM limit --------------------------------
    hidden = params[0][0].shape[1] if n_hidden > 0 else 0
    flops_per_row = 2 * (obs_dim * hidden
                         + max(0, n_hidden - 1) * hidden * hidden
                         + (hidden if n_hidden > 0 else obs_dim))
    weight_bytes = sum(int(w.size + b.size) * 4 for w, b in params)
    obs_itemsize = jnp.dtype(obs.dtype).itemsize
    cost = pl.CostEstimate(
        flops=int(flops_per_row * batch),
        transcendentals=0,
        bytes_accessed=int(batch * obs_dim * obs_itemsize + weight_bytes + batch * 4))

    # Scoped-VMEM: obs tile is lane-padded to 128 in VMEM, double-buffered.
    est_vmem = (2 * tb * 128 * obs_itemsize        # obs double buffers
                + 2 * 8 * tb * 4                   # lane-dense out double buffers
                + 6 * max(hidden, obs_dim, 8) * tb * 4   # live activations
                + (4 << 20))                       # weights + compiler scratch
    vmem_limit = int(min(max(est_vmem, 32 << 20), 56 << 20))

    kernel = functools.partial(_mlp_kernel, n_hidden)

    out = pl.pallas_call(
        kernel,
        out_shape=jax.ShapeDtypeStruct((1, batch), jnp.float32),
        grid=grid,
        in_specs=in_specs,
        out_specs=pl.BlockSpec((1, tb), lambda i: (0, i)),   # lane-dense output
        compiler_params=pltpu.CompilerParams(
            dimension_semantics=("parallel",),
            vmem_limit_bytes=vmem_limit),
        cost_estimate=cost,
    )(obs, *flat)

    # glue: (1, batch) row -> [batch]
    # TODO(synk): torch's .squeeze() on batch==1 returns a 0-d scalar; we keep (1,).
    return out[0]


def init_params(key, obs_dim, layer_size, n_layers):
    """Deterministic parameter init (synthetic, no checkpoint)."""
    params = []
    dims = [obs_dim] + [layer_size] * n_layers + [1]
    for i in range(len(dims) - 1):
        key, kw, kb = jax.random.split(key, 3)
        bound = 1.0 / jnp.sqrt(dims[i])
        w = jax.random.uniform(kw, (dims[i], dims[i + 1]),
                               minval=-bound, maxval=bound, dtype=jnp.float32)
        b = jax.random.uniform(kb, (1, dims[i + 1]),
                               minval=-bound, maxval=bound, dtype=jnp.float32)
        params.append((w, b))
    return params


def baseline_forward_ref(observations, params):
    """Pure-JAX reference for correctness check."""
    h = observations
    n_hidden = len(params) - 1
    for i, (w, b) in enumerate(params):
        h = h @ w + b
        if i < n_hidden:
            h = jnp.maximum(h, 0.0)
    return h[:, 0]


if __name__ == "__main__":
    key = jax.random.PRNGKey(0)

    obs_dim = 16       # dim(observation space)
    layer_size = 32    # config.layer_size
    n_layers = 2       # config.n_layers

    params = init_params(key, obs_dim, layer_size, n_layers)

    # Small batch: single exact block (tb == batch), no masking anywhere.
    key, kx = jax.random.split(key)
    obs_small = jax.random.normal(kx, (8, obs_dim), dtype=jnp.float32)
    out_small = jax.block_until_ready(baseline_forward(obs_small, params))
    assert out_small.ndim == 1 and out_small.shape == (8,), out_small.shape
    ref_small = baseline_forward_ref(obs_small, params)
    assert jnp.allclose(out_small, ref_small, atol=1e-4, rtol=1e-4)

    # Medium batch: exercises the >=2-block split (v7x dual-TC path) and the
    # masked partial tail block, with no wrapper padding.
    key, kx = jax.random.split(key)
    obs_big = jax.random.normal(kx, (520, obs_dim), dtype=jnp.float32)
    out_big = jax.block_until_ready(baseline_forward(obs_big, params))
    assert out_big.shape == (520,), out_big.shape
    ref_big = baseline_forward_ref(obs_big, params)
    assert jnp.allclose(out_big, ref_big, atol=1e-4, rtol=1e-4)

    # Optional bf16 observation streaming (halves HBM read traffic); compare
    # against the reference run on identically-rounded inputs.
    out_bf16 = jax.block_until_ready(
        baseline_forward(obs_big, params, obs_dtype=jnp.bfloat16))
    ref_bf16 = baseline_forward_ref(
        obs_big.astype(jnp.bfloat16).astype(jnp.float32), params)
    assert out_bf16.shape == (520,)
    assert jnp.allclose(out_bf16, ref_bf16, atol=1e-3, rtol=1e-3)

    print("KERNEL_OK")
</pallas_src>

<mosaic_0001>
module attributes {stable_mosaic.version = 11 : i64} {
  func.func @_mlp_kernel(%arg0: i32, %arg1: memref<8x16xf32, #tpu.memory_space<vmem>>, %arg2: memref<32x16xf32, #tpu.memory_space<vmem>>, %arg3: memref<32x1xf32, #tpu.memory_space<vmem>>, %arg4: memref<32x32xf32, #tpu.memory_space<vmem>>, %arg5: memref<32x1xf32, #tpu.memory_space<vmem>>, %arg6: memref<1x32xf32, #tpu.memory_space<vmem>>, %arg7: memref<1x1xf32, #tpu.memory_space<vmem>>, %arg8: memref<1x8xf32, #tpu.memory_space<vmem>>) attributes {dimension_semantics = [#tpu.dimension_semantics<parallel>], iteration_bounds = array<i64: 1>, scalar_prefetch = 0 : i64, scratch_operands = 0 : i64, tpu.core_type = #tpu.core_type<tc>, window_params = [{transform_indices = @transform_0, window_bounds = array<i64: 8, 16>}, {pipeline_mode = #tpu.pipeline_mode<synchronous>, transform_indices = @transform_1, window_bounds = array<i64: 32, 16>}, {pipeline_mode = #tpu.pipeline_mode<synchronous>, transform_indices = @transform_2, window_bounds = array<i64: 32, 1>}, {pipeline_mode = #tpu.pipeline_mode<synchronous>, transform_indices = @transform_3, window_bounds = array<i64: 32, 32>}, {pipeline_mode = #tpu.pipeline_mode<synchronous>, transform_indices = @transform_4, window_bounds = array<i64: 32, 1>}, {pipeline_mode = #tpu.pipeline_mode<synchronous>, transform_indices = @transform_5, window_bounds = array<i64: 1, 32>}, {pipeline_mode = #tpu.pipeline_mode<synchronous>, transform_indices = @transform_6, window_bounds = array<i64: 1, 1>}, {transform_indices = @transform_7, window_bounds = array<i64: 1, 8>}]} {
    %c0 = arith.constant 0 : index
    %c0_0 = arith.constant 0 : index
    %0 = vector.load %arg1[%c0, %c0_0] : memref<8x16xf32, #tpu.memory_space<vmem>>, vector<8x16xf32>
    %1 = tpu.transpose %0, [1, 0] : vector<8x16xf32> -> vector<16x8xf32>
    %c0_1 = arith.constant 0 : index
    %c0_2 = arith.constant 0 : index
    %2 = vector.load %arg2[%c0_1, %c0_2] : memref<32x16xf32, #tpu.memory_space<vmem>>, vector<32x16xf32>
    %c0_3 = arith.constant 0 : index
    %c0_4 = arith.constant 0 : index
    %3 = vector.load %arg3[%c0_3, %c0_4] : memref<32x1xf32, #tpu.memory_space<vmem>>, vector<32x1xf32>
    %cst = arith.constant dense<0.000000e+00> : vector<32x8xf32>
    %4 = tpu.matmul %2, %1, %cst {dimension_numbers = #tpu.dot_dimension_numbers<[1], [0], [0], [1], [0, 0, 1, 1], [], []>} : vector<32x16xf32>, vector<16x8xf32>, vector<32x8xf32> -> vector<32x8xf32>
    %5 = vector.broadcast %3 : vector<32x1xf32> to vector<32x8xf32>
    %6 = arith.addf %4, %5 : vector<32x8xf32>
    %cst_5 = arith.constant 0.000000e+00 : f32
    %7 = vector.broadcast %cst_5 : f32 to vector<32x8xf32>
    %8 = arith.maximumf %6, %7 : vector<32x8xf32>
    %c0_6 = arith.constant 0 : index
    %c0_7 = arith.constant 0 : index
    %9 = vector.load %arg4[%c0_6, %c0_7] : memref<32x32xf32, #tpu.memory_space<vmem>>, vector<32x32xf32>
    %c0_8 = arith.constant 0 : index
    %c0_9 = arith.constant 0 : index
    %10 = vector.load %arg5[%c0_8, %c0_9] : memref<32x1xf32, #tpu.memory_space<vmem>>, vector<32x1xf32>
    %cst_10 = arith.constant dense<0.000000e+00> : vector<32x8xf32>
    %11 = tpu.matmul %9, %8, %cst_10 {dimension_numbers = #tpu.dot_dimension_numbers<[1], [0], [0], [1], [0, 0, 1, 1], [], []>} : vector<32x32xf32>, vector<32x8xf32>, vector<32x8xf32> -> vector<32x8xf32>
    %12 = vector.broadcast %10 : vector<32x1xf32> to vector<32x8xf32>
    %13 = arith.addf %11, %12 : vector<32x8xf32>
    %cst_11 = arith.constant 0.000000e+00 : f32
    %14 = vector.broadcast %cst_11 : f32 to vector<32x8xf32>
    %15 = arith.maximumf %13, %14 : vector<32x8xf32>
    %c0_12 = arith.constant 0 : index
    %c0_13 = arith.constant 0 : index
    %16 = vector.load %arg6[%c0_12, %c0_13] : memref<1x32xf32, #tpu.memory_space<vmem>>, vector<1x32xf32>
    %c0_14 = arith.constant 0 : index
    %c0_15 = arith.constant 0 : index
    %17 = vector.load %arg7[%c0_14, %c0_15] : memref<1x1xf32, #tpu.memory_space<vmem>>, vector<1x1xf32>
    %cst_16 = arith.constant dense<0.000000e+00> : vector<1x8xf32>
    %18 = tpu.matmul %16, %15, %cst_16 {dimension_numbers = #tpu.dot_dimension_numbers<[1], [0], [0], [1], [0, 0, 1, 1], [], []>} : vector<1x32xf32>, vector<32x8xf32>, vector<1x8xf32> -> vector<1x8xf32>
    %19 = vector.broadcast %17 : vector<1x1xf32> to vector<1x8xf32>
    %20 = arith.addf %18, %19 : vector<1x8xf32>
    %c0_17 = arith.constant 0 : index
    %c0_18 = arith.constant 0 : index
    %21 = vector.load %arg8[%c0_17, %c0_18] : memref<1x8xf32, #tpu.memory_space<vmem>>, vector<1x8xf32>
    tpu.vector_store %arg8[%c0_17, %c0_18], %20 {strides = array<i32>} : memref<1x8xf32, #tpu.memory_space<vmem>>, vector<1x8xf32>,
    return
  }
  func.func @transform_0(%arg0: i32) -> (i32, i32) {
    %c0_i32 = arith.constant 0 : i32
    %c0_i32_0 = arith.constant 0 : i32
    return %arg0, %c0_i32 : i32, i32
  }
  func.func @transform_1(%arg0: i32) -> (i32, i32) {
    %c0_i32 = arith.constant 0 : i32
    %c0_i32_0 = arith.constant 0 : i32
    %c0_i32_1 = arith.constant 0 : i32
    return %c0_i32, %c0_i32_0 : i32, i32
  }
  func.func @transform_2(%arg0: i32) -> (i32, i32) {
    %c0_i32 = arith.constant 0 : i32
    %c0_i32_0 = arith.constant 0 : i32
    %c0_i32_1 = arith.constant 0 : i32
    return %c0_i32, %c0_i32_0 : i32, i32
  }
  func.func @transform_3(%arg0: i32) -> (i32, i32) {
    %c0_i32 = arith.constant 0 : i32
    %c0_i32_0 = arith.constant 0 : i32
    %c0_i32_1 = arith.constant 0 : i32
    return %c0_i32, %c0_i32_0 : i32, i32
  }
  func.func @transform_4(%arg0: i32) -> (i32, i32) {
    %c0_i32 = arith.constant 0 : i32
    %c0_i32_0 = arith.constant 0 : i32
    %c0_i32_1 = arith.constant 0 : i32
    return %c0_i32, %c0_i32_0 : i32, i32
  }
  func.func @transform_5(%arg0: i32) -> (i32, i32) {
    %c0_i32 = arith.constant 0 : i32
    %c0_i32_0 = arith.constant 0 : i32
    %c0_i32_1 = arith.constant 0 : i32
    return %c0_i32, %c0_i32_0 : i32, i32
  }
  func.func @transform_6(%arg0: i32) -> (i32, i32) {
    %c0_i32 = arith.constant 0 : i32
    %c0_i32_0 = arith.constant 0 : i32
    %c0_i32_1 = arith.constant 0 : i32
    return %c0_i32, %c0_i32_0 : i32, i32
  }
  func.func @transform_7(%arg0: i32) -> (i32, i32) {
    %c0_i32 = arith.constant 0 : i32
    %c0_i32_0 = arith.constant 0 : i32
    return %c0_i32, %arg0 : i32, i32
  }
}

</mosaic_0001>

<bundles_post_ra>
// kernel: tpu_custom_call.1
= control target key start
LH: loop header
LB: loop body
LE: loop exit
PB: predicated region body
PF: predicated region fallthrough
CT: control target
= control target key end

     0   :  { %s597_s0 = inlined_call_operand.vmem [shape: f32[8,16], index: 0, kind: input, shape index: {}]   ;;  %s598_s1 = inlined_call_operand.vmem [shape: f32[32,16], index: 1, kind: input, shape index: {}]   ;;  %s599_s2 = inlined_call_operand.vmem [shape: f32[32,1], index: 2, kind: input, shape index: {}]   ;;  %s600_s3 = inlined_call_operand.vmem [shape: f32[32,32], index: 3, kind: input, shape index: {}]   ;;  %s601_s4 = inlined_call_operand.vmem [shape: f32[32,1], index: 4, kind: input, shape index: {}]   ;;  %s602_s5 = inlined_call_operand.vmem [shape: f32[1,32], index: 5, kind: input, shape index: {}]   ;;  %s603_s6 = inlined_call_operand.<no memory space> [shape: f32[1,1], index: 6, kind: input, shape index: {}]   ;;  %s604_s7 = inlined_call_operand.hbm [shape: f32[1,8], index: 7, kind: output, shape index: {}]  }
   0x1   :  { %v12_v0 = vstv %s603_s6 }
   0x2   :  { %13 = vst [vmem:[#allocation2] sm:$0x1] %v12_v0 }
   0x3   :  { %v29_v1 = vld [vmem:[%s597_s0] sm:$0xff]  ;;  %vm58_vm0 = vcmask 130048   ;;  %v37_v3 = vld [vmem:[%s599_s2 + $0x18] sm:$0xff]  ;;  %v31_v4 = vld [vmem:[%s598_s1 + $0x8] sm:$0xff]  ;;  %v482_v5 = vmov 0  }
   0x4   :  { %v30_v2 = vld [vmem:[%s598_s1] sm:$0xff]  ;;  %421 = vmatprep.subr.msk.mxu0 %vm58_vm0, %v29_v1  ;;  %458 = vset.pattern.permute.xlu0 %v482_v5  ;;  %v35_v6 = vld [vmem:[%s599_s2 + $0x8] sm:$0xff]  ;;  %v32_v7 = vld [vmem:[%s598_s1 + $0x10] sm:$0xff] }
   0x5   :  { %423 = vmatprep.mubr.msk.f32.mxu0 %vm58_vm0, %v30_v2  ;;  %422 = vmatpush3.xpose.msk.msra.mxu0 %vm58_vm0, %v29_v1  ;;  %v36_v8 = vld [vmem:[%s599_s2 + $0x10] sm:$0xff] }
   0x6   :  { %55 = vperm.xlu0 %458, %v37_v3   ;;  %459 = vset.pattern.permute.xlu1 %v482_v5 }
   0x7   :  { %45 = vperm.xlu1 %459, %v35_v6  }
   0x8   :  { %14 = vsyncpa [#allocation4], 0  ;;  %424 = vmatmul.mubr.msk.f32.vlgmr.msra.gmra.mxu0 %vm58_vm0, %v31_v4  ;;  %v34_v9 = vld [vmem:[%s599_s2] sm:$0xff]  ;;  %v33_v10 = vld [vmem:[%s598_s1 + $0x18] sm:$0xff]  ;;  %vm191_vm1 = vcmask 261120   ;;  %v483_v36 = vmov 0.0   ;;  %v300_v54 = vlaneseq }
   0x9   :  { %426 = vmatprep.mubr.msk.f32.mxu0 %vm58_vm0, %v32_v7  ;;  %v170_v11 = vld [vmem:[%s601_s4 + $0x18] sm:$0xff]  ;;  %v169_v12 = vld [vmem:[%s601_s4 + $0x10] sm:$0xff]  ;;  %v168_v13 = vld [vmem:[%s601_s4 + $0x8] sm:$0xff]  ;;  %443 = vmatprep.subr.mxu0 %v483_v36  ;;  %vm484_vm2 = vmmov 0   ;;  %s485_s9 = smov [#allocation3]   ;;  %vm377_vm3 = vcmask 57344  }
   0xa   :  { %50 = vperm.xlu0 %458, %v36_v8   ;;  %v167_v14 = vld [vmem:[%s601_s4] sm:$0xff]  ;;  %v164_v33 = vld [vmem:[%s600_s3 + $0x8] sm:$0xff]  ;;  %v165_v34 = vld [vmem:[%s600_s3 + $0x10] sm:$0xff]  ;;  %v301_v55 = vshrl.u32 %v300_v54, 7  ;;  %s385_s0 = sshll.u32 %s485_s9, 4  ;;  %s386_s0 = int_to_ptr.vmem [resolvable:$true] %s385_s0 }
   0xb   :  { %40 = vperm.xlu1 %459, %v34_v9   ;;  %v294_v15 = vld [vmem:[#allocation2] sm:$0x1]  ;;  %v166_v35 = vld [vmem:[%s600_s3 + $0x18] sm:$0xff]  ;;  %s460_s10 = scalar_lea.vmem %s386_s0, 16  ;;  %p465_p1 = scmp.lt.s32.totalorder %s386_s0, %s386_s0 }
   0xc   :  { %427 = vmatmul.mubr.msk.f32.gmra.mxu0 %vm58_vm0, %v33_v10  ;;  %v163_v16 = vld [vmem:[%s600_s3] sm:$0xff]  ;;  %v302_v56 = vsub.s32 0, %v301_v55  ;;  %p461_p0 = scmp.ne.s32.totalorder %s386_s0, %s460_s10 }
   0xd   :  { %437 = vmatprep.mubr.msk.f32.mxu1 %vm191_vm1, %v163_v16  ;;  %451 = vmatprep.mubr.msk.f32.mxu0 %vm484_vm2, %v483_v36  ;;  %v293_v53 = vld [vmem:[%s602_s5] sm:$0x1]  ;;  %s464_s5 = scalar_lea.vmem %s386_s0, 32 }
   0xe   :  { %188 = vperm.xlu0 %458, %v170_v11   ;;  %p466_p2 = scmp.lt.s32.totalorder %s464_s5, %s460_s10 }
   0xf   :  { %183 = vperm.xlu1 %459, %v169_v12  }
  0x10   :  { %p467_p3 = por %p466_p2, %p465_p1 }
  0x12   :  { %178 = vperm.xlu0 %458, %v168_v13   ;;  %p468_p4 = pnand %p467_p3, %p461_p0 }
  0x13   :  { %173 = vperm.xlu1 %459, %v167_v14  }
  0x16   :  { %297 = vperm.xlu0 %458, %v294_v15  }
  0x81   :  { %v56_v17 = vpop.permute.xlu0 %55 }
  0x82   :  { %v46_v19 = vpop.permute.xlu1 %45 }
  0x85   :  { %v51_v23 = vpop.permute.xlu0 %50 }
  0x86   :  { %v41_v28 = vpop.permute.xlu1 %40 }
  0x89   :  { %v189_v37 = vpop.permute.xlu0 %188 }
  0x8a   :  { %v184_v39 = vpop.permute.xlu1 %183 }
  0x8d   :  { %v179_v43 = vpop.permute.xlu0 %178 }
  0x8e   :  { %v174_v48 = vpop.permute.xlu1 %173 }
  0x91   :  { %v298_v57 = vpop.permute.xlu0 %297 }
  0x92   :  { %v303_v58 = vrot.slane %v298_v57, %v302_v56 }
  0xc8   :  { %v425_v18 = vpop.f32.mrf.mxu0 }
  0xc9   :  { %v146_v25 = vadd.f32 %v425_v18, %v46_v19 }
  0xca   :  { %v140_v20 = vpop.f32.mrf.mxu0 }
  0xcb   :  { %v141_v29 = vadd.f32 %v140_v20, %v41_v28  ;;  %v160_v31 = vmax.f32 %v146_v25, 0.0 }
  0xcc   :  { %v428_v21 = vpop.f32.mrf.mxu0 }
  0xcd   :  { %v156_v22 = vadd.f32 %v428_v21, %v56_v17  ;;  %v159_v32 = vmax.f32 %v141_v29, 0.0 }
  0xce   :  { %v150_v24 = vpop.f32.mrf.mxu0 }
  0xcf   :  { %v162_v26 = vmax.f32 %v156_v22, 0.0  ;;  %v151_v27 = vadd.f32 %v150_v24, %v51_v23 }
  0xd1   :  { %v161_v30 = vmax.f32 %v151_v27, 0.0  ;;  %429 = vmatprep.subr.mxu1 %v162_v26 }
  0xd2   :  { %430 = vmatpush3.msra.mxu1 %v162_v26 }
  0xd3   :  { %431 = vmatprep.subr.mxu1 %v161_v30 }
  0xd4   :  { %432 = vmatpush3.msra.mxu1 %v161_v30 }
  0xd5   :  { %433 = vmatprep.subr.mxu1 %v160_v31 }
  0xd6   :  { %434 = vmatpush3.msra.mxu1 %v160_v31 }
  0xd7   :  { %435 = vmatprep.subr.mxu1 %v159_v32 }
  0xd8   :  { %436 = vmatpush3.msra.mxu1 %v159_v32 }
  0xd9   :  { %438 = vmatmul.mubr.msk.f32.vlgmr.msra.gmra.mxu1 %vm191_vm1, %v164_v33 }
  0xda   :  { %440 = vmatprep.mubr.msk.f32.mxu1 %vm191_vm1, %v165_v34 }
  0xdd   :  { %441 = vmatmul.mubr.msk.f32.gmra.mxu1 %vm191_vm1, %v166_v35 }
 0x199   :  { %v439_v38 = vpop.f32.mrf.mxu1 }
 0x19a   :  { %v276_v45 = vadd.f32 %v439_v38, %v179_v43 }
 0x19b   :  { %v270_v40 = vpop.f32.mrf.mxu1 }
 0x19c   :  { %v271_v49 = vadd.f32 %v270_v40, %v174_v48  ;;  %v290_v51 = vmax.f32 %v276_v45, 0.0 }
 0x19d   :  { %v442_v41 = vpop.f32.mrf.mxu1 }
 0x19e   :  { %v286_v42 = vadd.f32 %v442_v41, %v189_v37  ;;  %v289_v52 = vmax.f32 %v271_v49, 0.0 }
 0x19f   :  { %v280_v44 = vpop.f32.mrf.mxu1 }
 0x1a0   :  { %v292_v46 = vmax.f32 %v286_v42, 0.0  ;;  %v281_v47 = vadd.f32 %v280_v44, %v184_v39 }
 0x1a2   :  { %v291_v50 = vmax.f32 %v281_v47, 0.0  ;;  %444 = vmatpush3.msra.mxu0 %v292_v46 }
 0x1a3   :  { %445 = vmatprep.subr.mxu0 %v483_v36 }
 0x1a4   :  { %446 = vmatpush3.msra.mxu0 %v291_v50 }
 0x1a5   :  { %447 = vmatprep.subr.mxu0 %v483_v36 }
 0x1a6   :  { %448 = vmatpush3.msra.mxu0 %v290_v51 }
 0x1a7   :  { %449 = vmatprep.subr.mxu0 %v483_v36 }
 0x1a8   :  { %450 = vmatpush3.msra.mxu0 %v289_v52 }
 0x1a9   :  { %452 = vmatmul.mubr.msk.f32.vlgmr.msra.gmra.mxu0 %vm191_vm1, %v293_v53 }
 0x269   :  { %v373_v59 = vpop.f32.mrf.mxu0 }
 0x26a   :  { %v374_v60 = vadd.f32 %v373_v59, %v303_v58 }
 0x26b   :  { %v453_v61 = vpop.f32.mrf.mxu0 }
 0x26c   :  { %378 = vst.msk [vmem:[#allocation3] sm:$0x1] %vm377_vm3, %v374_v60 }
 0x26d   :  { %471 = shalt.err (!%p468_p4)
}
 0x26e   :  { %388 = dma.vmem_to_hbm [thread:$0]  %s386_s0, 16, %s604_s7, [#allocation4]  }
 0x26f   :  { %480 = dma.done.wait [#allocation4], 16  }
 0x270   :  { %481 = vsyncadd [#allocation4], 4294967280 }
 0x271   :  { %392 = vsyncpa [#allocation4], 1 }

</bundles_post_ra>
